<compile_context>
chip_gen: v7x
topology: tpu7x:2x2x1
jax: 0.10.0
libtpu: 0.0.40
codegen_flags: <defaults>
</compile_context>

<pallas_src>
import functools
import math

import jax
import jax.numpy as jnp
from jax import lax
from jax.experimental import pallas as pl
from jax.experimental.pallas import tpu as pltpu

LN_EPS = 1e-5
GELU_C = math.sqrt(2.0 / math.pi)
MXU_DTYPE = jnp.bfloat16            # MXU operand dtype (accumulation stays f32)
MXU_ITEMSIZE = 2 if MXU_DTYPE == jnp.bfloat16 else 4


# ----------------------------------------------------------------------------- VMEM budget / tiling

def _vmem_capacity_bytes():
    try:
        cap = getattr(pltpu.get_tpu_info(), "vmem_capacity_bytes", None)
    except Exception:
        cap = None
    return int(cap) if cap else 64 * 1024 * 1024      # conservative default (v7x per-core)


_VMEM_CAP = _vmem_capacity_bytes()
VMEM_LIMIT = max(min(_VMEM_CAP - (8 << 20), 100 << 20), 32 << 20)   # leave compiler headroom
_TILE_BUDGET = int(VMEM_LIMIT * 0.8)

_TILE_CANDIDATES = (4096, 2048, 1024, 512, 256, 128, 64, 32, 16, 8)


def _pick_tile(n, per_unit_bytes, fixed_bytes, budget, cap=4096):
    """Largest candidate divisor of n whose estimated VMEM working set fits the budget."""
    for t in _TILE_CANDIDATES:
        if t <= min(cap, n) and n % t == 0 and fixed_bytes + t * per_unit_bytes <= budget:
            return t
    return n   # full extent is always legal (see padding TODO above)


# ----------------------------------------------------------------------------- kernels

def _ln_qkv_kernel(x_ref, g_ref, b_ref, w_ref, wb_ref, o_ref, xn_ref):
    # fused LayerNorm -> qkv projection, head-major output.  LN computed once per row tile
    # (h == 0) into a VMEM scratch, reused for every head's column block.
    @pl.when(pl.program_id(1) == 0)
    def _():
        x = x_ref[...].astype(jnp.float32)
        mu = jnp.mean(x, axis=-1, keepdims=True)
        var = jnp.mean(jnp.square(x - mu), axis=-1, keepdims=True)
        xn_ref[...] = ((x - mu) * lax.rsqrt(var + LN_EPS) * g_ref[...]
                       + b_ref[...]).astype(xn_ref.dtype)

    y = jnp.dot(xn_ref[...], w_ref[...].astype(MXU_DTYPE),
                preferred_element_type=jnp.float32) + wb_ref[...]
    o_ref[...] = y.astype(o_ref.dtype)


def _attn_proj_res_kernel(qkv_ref, cos_ref, sin_ref, wp_ref, bp_ref, x_ref, o_ref, acc_ref):
    # One (batch, head) pair per grid step.  The head axis is a reduction: y_h @ Wproj_h is
    # accumulated into a (T, C) f32 scratch initialized with residual + c_proj bias, so c_proj
    # and the residual add are fused into the attention epilogue.
    h = pl.program_id(1)

    @pl.when(h == 0)
    def _():
        acc_ref[...] = x_ref[...].astype(jnp.float32) + bp_ref[...]

    qkv = qkv_ref[...].astype(jnp.float32)        # (T, 3D): [q | k | v], q/k in split-half order
    d = qkv.shape[-1] // 3
    half = d // 2
    scale = 1.0 / math.sqrt(d)
    q, k, v = qkv[:, :d], qkv[:, d:2 * d], qkv[:, 2 * d:]
    cos = cos_ref[...]
    sin = sin_ref[...]                            # rotate-half sign already folded into the table

    def rope(z):
        if half % 128 == 0:                       # lane-aligned: XLU rotate (free slot)
            zr = pltpu.roll(z, shift=half, axis=-1)
        else:
            zr = jnp.concatenate([z[:, half:], z[:, :half]], axis=-1)
        return z * cos + zr * sin

    q, k = rope(q), rope(k)
    s = lax.dot_general(q.astype(MXU_DTYPE), k.astype(MXU_DTYPE),
                        (((1,), (1,)), ((), ())),
                        preferred_element_type=jnp.float32) * scale       # (T, T)
    s = s - jnp.max(s, axis=-1, keepdims=True)
    p = jnp.exp(s)
    p = p * pl.reciprocal(jnp.sum(p, axis=-1, keepdims=True), approx=True)
    y = jnp.dot(p.astype(MXU_DTYPE), v.astype(MXU_DTYPE),
                preferred_element_type=jnp.float32)                        # (T, D)
    acc_ref[...] += jnp.dot(y.astype(MXU_DTYPE), wp_ref[...].astype(MXU_DTYPE),
                            preferred_element_type=jnp.float32)            # += y_h @ Wproj_h

    @pl.when(h == pl.num_programs(1) - 1)
    def _():
        o_ref[...] = acc_ref[...].astype(o_ref.dtype)


def _ln_mlp_res_kernel(x_ref, g_ref, b_ref, w1_ref, b1_ref, w2_ref, b2_ref, o_ref,
                       xn_ref, acc_ref):
    # fused LayerNorm -> Linear -> tanh-GELU -> Linear -> residual, blocked over the hidden dim
    # (axis 1, "arbitrary") with a float32 VMEM accumulator (P3 pattern).
    j = pl.program_id(1)

    @pl.when(j == 0)
    def _():
        x = x_ref[...].astype(jnp.float32)
        mu = jnp.mean(x, axis=-1, keepdims=True)
        var = jnp.mean(jnp.square(x - mu), axis=-1, keepdims=True)
        xn_ref[...] = ((x - mu) * lax.rsqrt(var + LN_EPS) * g_ref[...]
                       + b_ref[...]).astype(xn_ref.dtype)
        acc_ref[...] = x + b2_ref[...]            # residual + final bias, added exactly once

    h = jnp.dot(xn_ref[...], w1_ref[...].astype(MXU_DTYPE),
                preferred_element_type=jnp.float32) + b1_ref[...]
    h = 0.5 * h * (1.0 + jnp.tanh(GELU_C * (h + 0.044715 * h * h * h)))
    acc_ref[...] += jnp.dot(h.astype(MXU_DTYPE), w2_ref[...].astype(MXU_DTYPE),
                            preferred_element_type=jnp.float32)

    @pl.when(j == pl.num_programs(1) - 1)
    def _():
        o_ref[...] = acc_ref[...].astype(o_ref.dtype)


# ----------------------------------------------------------------------------- wrappers

def ln_qkv(x2, g, b, w_heads, b_heads):
    n, c = x2.shape
    n_head, _, d3 = w_heads.shape
    per_row = 4 * (2 * c + 2 * d3) + MXU_ITEMSIZE * c        # x(2x) + out(2x) + xn scratch
    fixed = 2 * 4 * (c * d3 + d3)                            # per-head w + bias, double-buffered
    tm = _pick_tile(n, per_row, fixed, _TILE_BUDGET)
    return pl.pallas_call(
        _ln_qkv_kernel,
        out_shape=jax.ShapeDtypeStruct((n_head, n, d3), x2.dtype),
        grid=(n // tm, n_head),
        in_specs=[pl.BlockSpec((tm, c), lambda i, h: (i, 0)),
                  pl.BlockSpec((1, c), lambda i, h: (0, 0)),
                  pl.BlockSpec((1, c), lambda i, h: (0, 0)),
                  pl.BlockSpec((None, c, d3), lambda i, h: (h, 0, 0)),
                  pl.BlockSpec((None, 1, d3), lambda i, h: (h, 0, 0))],
        out_specs=pl.BlockSpec((None, tm, d3), lambda i, h: (h, i, 0)),
        scratch_shapes=[pltpu.VMEM((tm, c), MXU_DTYPE)],     # xn (LN output)
        compiler_params=pltpu.CompilerParams(
            # rows shard across cores (v7x); the head axis reuses the xn scratch -> "arbitrary"
            dimension_semantics=("parallel", "arbitrary"),
            vmem_limit_bytes=VMEM_LIMIT),
    )(x2, g.reshape(1, c), b.reshape(1, c), w_heads, b_heads)


def attention_proj_res(qkv_heads, cos, sin, wp_heads, bp, x):
    # TODO(synk): add a KV-block grid axis (flash-style m/l/acc) before targeting long T;
    #             here the whole (T, 3D) slab and (T, T) scores fit VMEM comfortably.
    n_head, n, d3 = qkv_heads.shape
    b, t, c = x.shape
    d = d3 // 3
    qkv4 = qkv_heads.reshape(n_head, b, t, d3)
    return pl.pallas_call(
        _attn_proj_res_kernel,
        out_shape=jax.ShapeDtypeStruct((b, t, c), x.dtype),
        grid=(b, n_head),
        in_specs=[pl.BlockSpec((None, None, t, d3), lambda bi, h: (h, bi, 0, 0)),
                  pl.BlockSpec((t, d), lambda bi, h: (0, 0)),
                  pl.BlockSpec((t, d), lambda bi, h: (0, 0)),
                  pl.BlockSpec((None, d, c), lambda bi, h: (h, 0, 0)),
                  pl.BlockSpec((1, c), lambda bi, h: (0, 0)),
                  pl.BlockSpec((None, t, c), lambda bi, h: (bi, 0, 0))],
        out_specs=pl.BlockSpec((None, t, c), lambda bi, h: (bi, 0, 0)),
        scratch_shapes=[pltpu.VMEM((t, c), jnp.float32)],    # residual + c_proj accumulator
        compiler_params=pltpu.CompilerParams(
            dimension_semantics=("parallel", "arbitrary"),
            vmem_limit_bytes=VMEM_LIMIT),
    )(qkv4, cos, sin, wp_heads, bp.reshape(1, c), x)


def ln_mlp_res(x, g, b, w1, b1, w2, b2):
    n, c = x.shape
    hd = w1.shape[1]
    # hidden tile: w1 col block + w2 row block (both double-buffered) get <= half the budget.
    # (on v5e, if weight DMA is exposed, sweep pipeline_mode=pl.Buffered(3) on the w1/w2 specs)
    th = _pick_tile(hd, per_unit_bytes=2 * 2 * c * 4, fixed_bytes=0,
                    budget=_TILE_BUDGET // 2, cap=1024)
    per_row = 4 * (2 * c + 2 * c + c) + MXU_ITEMSIZE * c     # x(2x) + out(2x) + acc + xn
    fixed = 2 * 4 * (c * th + th * c + th + c)
    tm = _pick_tile(n, per_row, fixed, _TILE_BUDGET)
    return pl.pallas_call(
        _ln_mlp_res_kernel,
        out_shape=jax.ShapeDtypeStruct((n, c), x.dtype),
        grid=(n // tm, hd // th),
        in_specs=[pl.BlockSpec((tm, c), lambda i, j: (i, 0)),
                  pl.BlockSpec((1, c), lambda i, j: (0, 0)),
                  pl.BlockSpec((1, c), lambda i, j: (0, 0)),
                  pl.BlockSpec((c, th), lambda i, j: (0, j)),
                  pl.BlockSpec((1, th), lambda i, j: (0, j)),
                  pl.BlockSpec((th, c), lambda i, j: (j, 0)),
                  pl.BlockSpec((1, c), lambda i, j: (0, 0))],
        out_specs=pl.BlockSpec((tm, c), lambda i, j: (i, 0)),
        scratch_shapes=[pltpu.VMEM((tm, c), MXU_DTYPE),      # xn (LN output)
                        pltpu.VMEM((tm, c), jnp.float32)],   # accumulator
        compiler_params=pltpu.CompilerParams(
            dimension_semantics=("parallel", "arbitrary"),
            vmem_limit_bytes=VMEM_LIMIT),
    )(x, g.reshape(1, c), b.reshape(1, c), w1, b1.reshape(1, hd), w2, b2.reshape(1, c))


# ----------------------------------------------------------------------------- glue

def rope_tables_split(length, dim):
    # cos / sign-folded-sin tables in the split-half (evens-then-odds) layout matching the
    # permuted q/k weight columns; the rotate-half negation is baked into the sin table.
    inv_freq = 1.0 / (10000.0 ** (jnp.arange(0, dim, 2, dtype=jnp.float32) / dim))
    t = jnp.arange(length, dtype=jnp.float32)
    freqs = t[:, None] * inv_freq[None, :]                    # (L, dim/2)
    cos, sin = jnp.cos(freqs), jnp.sin(freqs)
    return (jnp.concatenate([cos, cos], axis=-1),
            jnp.concatenate([-sin, sin], axis=-1))            # (L, dim)


def prepare_kernel_params(p, n_head):
    # One-time (outside jit): permute c_attn columns into per-head [q(evens|odds) | k(evens|odds) | v]
    # groups and reshape weights to head-major layouts consumed by the kernels.
    c = p["ln1_g"].shape[0]
    d = c // n_head
    rp = jnp.concatenate([jnp.arange(0, d, 2), jnp.arange(1, d, 2)])    # split-half RoPE perm
    cols = []
    for h in range(n_head):
        base = h * d
        cols.append(base + rp)                       # q_h
        cols.append(c + base + rp)                   # k_h
        cols.append(2 * c + base + jnp.arange(d))    # v_h (original order)
    perm = jnp.concatenate(cols)                     # (3C,)
    q = dict(p)
    q["w_qkv_heads"] = p["c_attn_w"][:, perm].reshape(c, n_head, 3 * d).transpose(1, 0, 2)
    q["b_qkv_heads"] = p["c_attn_b"][perm].reshape(n_head, 1, 3 * d)
    q["wp_heads"] = p["c_proj_w"].reshape(n_head, d, c)
    for k in ("c_attn_w", "c_attn_b", "c_proj_w"):
        del q[k]
    return q


def encoder_block_forward(p, x, n_head):
    B, T, C = x.shape
    D = C // n_head
    N = B * T
    x2 = x.reshape(N, C)

    # ---- LN1 + qkv projection (fused, head-major output) ----
    qkv_heads = ln_qkv(x2, p["ln1_g"], p["ln1_b"], p["w_qkv_heads"], p["b_qkv_heads"])  # (H,N,3D)

    # ---- RoPE self-attention (non-causal) + c_proj + residual (fused) ----
    cos, sin = rope_tables_split(T, D)
    x_attn = attention_proj_res(qkv_heads, cos, sin, p["wp_heads"], p["c_proj_b"], x)   # (B,T,C)

    # ---- LN2 + MLP + residual (fused) ----
    out = ln_mlp_res(x_attn.reshape(N, C), p["ln2_g"], p["ln2_b"],
                     p["fc_w"], p["fc_b"], p["proj_w"], p["proj_b"])
    return out.reshape(B, T, C)


# ----------------------------------------------------------------------------- params

def init_params(key, C):
    ks = iter(jax.random.split(key, 12))

    def w(k, shape, scale=0.1):
        return scale * jax.random.normal(k, shape, jnp.float32)

    return {
        "ln1_g": 1.0 + 0.1 * jax.random.normal(next(ks), (C,), jnp.float32),
        "ln1_b": 0.05 * jax.random.normal(next(ks), (C,), jnp.float32),
        "c_attn_w": w(next(ks), (C, 3 * C)), "c_attn_b": w(next(ks), (3 * C,), 0.02),
        "c_proj_w": w(next(ks), (C, C)), "c_proj_b": w(next(ks), (C,), 0.02),
        "ln2_g": 1.0 + 0.1 * jax.random.normal(next(ks), (C,), jnp.float32),
        "ln2_b": 0.05 * jax.random.normal(next(ks), (C,), jnp.float32),
        "fc_w": w(next(ks), (C, 4 * C)), "fc_b": w(next(ks), (4 * C,), 0.02),
        "proj_w": w(next(ks), (4 * C, C)), "proj_b": w(next(ks), (C,), 0.02),
    }


# ----------------------------------------------------------------------------- pure-JAX reference

def ref_forward(p, x, n_head):
    B, T, C = x.shape
    H, D = n_head, C // n_head

    def ln(z, g, b):
        mu = jnp.mean(z, axis=-1, keepdims=True)
        var = jnp.mean((z - mu) ** 2, axis=-1, keepdims=True)
        return (z - mu) / jnp.sqrt(var + LN_EPS) * g + b

    def rope_interleaved(L, dim):
        inv_freq = 1.0 / (10000.0 ** (jnp.arange(0, dim, 2, dtype=jnp.float32) / dim))
        freqs = jnp.arange(L, dtype=jnp.float32)[:, None] * inv_freq[None, :]
        emb = jnp.repeat(freqs, 2, axis=-1)
        return jnp.cos(emb), jnp.sin(emb)

    def rotate_every_two(z):
        z1, z2 = z[..., 0::2], z[..., 1::2]
        return jnp.stack([-z2, z1], axis=-1).reshape(z.shape)

    def apply_rope(z, cos, sin):
        return z * cos + rotate_every_two(z) * sin

    def heads(z):
        return z.reshape(B, T, H, D).transpose(0, 2, 1, 3)

    h = ln(x, p["ln1_g"], p["ln1_b"])
    q, k, v = jnp.split(h @ p["c_attn_w"] + p["c_attn_b"], 3, axis=-1)
    q, k, v = heads(q), heads(k), heads(v)
    cos, sin = rope_interleaved(T, D)
    q = apply_rope(q, cos, sin)
    k = apply_rope(k, cos, sin)
    s = jnp.einsum("bhtd,bhsd->bhts", q, k) / math.sqrt(D)
    y = jnp.einsum("bhts,bhsd->bhtd", jax.nn.softmax(s, axis=-1), v)
    y = y.transpose(0, 2, 1, 3).reshape(B, T, C)
    x = x + y @ p["c_proj_w"] + p["c_proj_b"]

    h = ln(x, p["ln2_g"], p["ln2_b"])
    h = h @ p["fc_w"] + p["fc_b"]
    h = 0.5 * h * (1.0 + jnp.tanh(GELU_C * (h + 0.044715 * h ** 3)))
    return x + h @ p["proj_w"] + p["proj_b"]


# ----------------------------------------------------------------------------- main

if __name__ == "__main__":
    B, T, C, H = 2, 8, 32, 4        # batch, seq, n_embd, n_head  (head dim = 8)

    key = jax.random.PRNGKey(0)
    kp, kx = jax.random.split(key)
    params = init_params(kp, C)
    x = jax.random.normal(kx, (B, T, C), jnp.float32)

    kernel_params = prepare_kernel_params(params, H)    # one-time weight layout transform
    fwd = jax.jit(functools.partial(encoder_block_forward, n_head=H))
    out = jax.block_until_ready(fwd(kernel_params, x))

    ref = ref_forward(params, x, H)
    assert out.shape == (B, T, C) and out.dtype == jnp.float32
    max_err = float(jnp.max(jnp.abs(out - ref)))
    # bf16 MXU operands (f32 accumulation) + approx softmax reciprocal => looser tolerance
    if max_err > 5e-2:
        raise AssertionError(f"kernel does not match reference, max abs err = {max_err}")
    print("KERNEL_OK")
</pallas_src>

<mosaic_0001>
module attributes {stable_mosaic.version = 11 : i64} {
  func.func @_ln_qkv_kernel(%arg0: i32, %arg1: i32, %arg2: memref<16x32xf32, #tpu.memory_space<vmem>>, %arg3: memref<1x32xf32, #tpu.memory_space<vmem>>, %arg4: memref<1x32xf32, #tpu.memory_space<vmem>>, %arg5: memref<1x32x24xf32, #tpu.memory_space<vmem>>, %arg6: memref<1x1x24xf32, #tpu.memory_space<vmem>>, %arg7: memref<1x16x24xf32, #tpu.memory_space<vmem>>, %arg8: memref<16x32xbf16, #tpu.memory_space<vmem>>) attributes {dimension_semantics = [#tpu.dimension_semantics<parallel>, #tpu.dimension_semantics<arbitrary>], iteration_bounds = array<i64: 1, 4>, scalar_prefetch = 0 : i64, scratch_operands = 1 : i64, tpu.core_type = #tpu.core_type<tc>, window_params = [{transform_indices = @transform_0, window_bounds = array<i64: 16, 32>}, {pipeline_mode = #tpu.pipeline_mode<synchronous>, transform_indices = @transform_1, window_bounds = array<i64: 1, 32>}, {pipeline_mode = #tpu.pipeline_mode<synchronous>, transform_indices = @transform_2, window_bounds = array<i64: 1, 32>}, {transform_indices = @transform_3, window_bounds = array<i64: 1, 32, 24>}, {transform_indices = @transform_4, window_bounds = array<i64: 1, 1, 24>}, {transform_indices = @transform_5, window_bounds = array<i64: 1, 16, 24>}]} {
    %c0_i32 = arith.constant 0 : i32
    %0 = arith.cmpi eq, %arg1, %c0_i32 : i32
    %1 = arith.extui %0 : i1 to i32
    %c0_i32_0 = arith.constant 0 : i32
    %2 = arith.cmpi ne, %1, %c0_i32_0 : i32
    scf.if %2 {
      %c0_11 = arith.constant 0 : index
      %c0_12 = arith.constant 0 : index
      %15 = vector.load %arg2[%c0_11, %c0_12] : memref<16x32xf32, #tpu.memory_space<vmem>>, vector<16x32xf32>
      %cst_13 = arith.constant dense<0.000000e+00> : vector<16xf32>
      %16 = vector.multi_reduction <add>, %15, %cst_13 [1] : vector<16x32xf32> to vector<16xf32>
      %17 = vector.shape_cast %16 : vector<16xf32> to vector<16x1xf32>
      %cst_14 = arith.constant 3.200000e+01 : f32
      %18 = vector.broadcast %cst_14 : f32 to vector<16x1xf32>
      %19 = arith.divf %17, %18 : vector<16x1xf32>
      %20 = vector.broadcast %19 : vector<16x1xf32> to vector<16x32xf32>
      %21 = arith.subf %15, %20 : vector<16x32xf32>
      %22 = arith.mulf %21, %21 : vector<16x32xf32>
      %cst_15 = arith.constant dense<0.000000e+00> : vector<16xf32>
      %23 = vector.multi_reduction <add>, %22, %cst_15 [1] : vector<16x32xf32> to vector<16xf32>
      %24 = vector.shape_cast %23 : vector<16xf32> to vector<16x1xf32>
      %cst_16 = arith.constant 3.200000e+01 : f32
      %25 = vector.broadcast %cst_16 : f32 to vector<16x1xf32>
      %26 = arith.divf %24, %25 : vector<16x1xf32>
      %27 = vector.broadcast %19 : vector<16x1xf32> to vector<16x32xf32>
      %28 = arith.subf %15, %27 : vector<16x32xf32>
      %cst_17 = arith.constant 9.99999974E-6 : f32
      %29 = vector.broadcast %cst_17 : f32 to vector<16x1xf32>
      %30 = arith.addf %26, %29 : vector<16x1xf32>
      %31 = math.rsqrt %30 : vector<16x1xf32>
      %32 = vector.broadcast %31 : vector<16x1xf32> to vector<16x32xf32>
      %33 = arith.mulf %28, %32 : vector<16x32xf32>
      %c0_18 = arith.constant 0 : index
      %c0_19 = arith.constant 0 : index
      %34 = vector.load %arg3[%c0_18, %c0_19] : memref<1x32xf32, #tpu.memory_space<vmem>>, vector<1x32xf32>
      %35 = vector.broadcast %34 : vector<1x32xf32> to vector<16x32xf32>
      %36 = arith.mulf %33, %35 : vector<16x32xf32>
      %c0_20 = arith.constant 0 : index
      %c0_21 = arith.constant 0 : index
      %37 = vector.load %arg4[%c0_20, %c0_21] : memref<1x32xf32, #tpu.memory_space<vmem>>, vector<1x32xf32>
      %38 = vector.broadcast %37 : vector<1x32xf32> to vector<16x32xf32>
      %39 = arith.addf %36, %38 : vector<16x32xf32>
      %40 = arith.truncf %39 : vector<16x32xf32> to vector<16x32xbf16>
      %c0_22 = arith.constant 0 : index
      %c0_23 = arith.constant 0 : index
      %41 = vector.load %arg8[%c0_22, %c0_23] : memref<16x32xbf16, #tpu.memory_space<vmem>>, vector<16x32xbf16>
      tpu.vector_store %arg8[%c0_22, %c0_23], %40 {strides = array<i32>} : memref<16x32xbf16, #tpu.memory_space<vmem>>, vector<16x32xbf16>,
    } else {
    }
    %c0 = arith.constant 0 : index
    %c0_1 = arith.constant 0 : index
    %3 = vector.load %arg8[%c0, %c0_1] : memref<16x32xbf16, #tpu.memory_space<vmem>>, vector<16x32xbf16>
    %c0_2 = arith.constant 0 : index
    %c0_3 = arith.constant 0 : index
    %c0_4 = arith.constant 0 : index
    %4 = vector.load %arg5[%c0_2, %c0_3, %c0_4] : memref<1x32x24xf32, #tpu.memory_space<vmem>>, vector<1x32x24xf32>
    %5 = vector.shape_cast %4 : vector<1x32x24xf32> to vector<32x24xf32>
    %6 = arith.truncf %5 : vector<32x24xf32> to vector<32x24xbf16>
    %cst = arith.constant dense<0.000000e+00> : vector<16x24xf32>
    %7 = tpu.matmul %3, %6, %cst {dimension_numbers = #tpu.dot_dimension_numbers<[1], [0], [0], [1], [0, 0, 1, 1], [], []>} : vector<16x32xbf16>, vector<32x24xbf16>, vector<16x24xf32> -> vector<16x24xf32>
    %c0_5 = arith.constant 0 : index
    %c0_6 = arith.constant 0 : index
    %c0_7 = arith.constant 0 : index
    %8 = vector.load %arg6[%c0_5, %c0_6, %c0_7] : memref<1x1x24xf32, #tpu.memory_space<vmem>>, vector<1x1x24xf32>
    %9 = vector.shape_cast %8 : vector<1x1x24xf32> to vector<1x24xf32>
    %10 = vector.broadcast %9 : vector<1x24xf32> to vector<16x24xf32>
    %11 = arith.addf %7, %10 : vector<16x24xf32>
    %c0_8 = arith.constant 0 : index
    %c0_9 = arith.constant 0 : index
    %c0_10 = arith.constant 0 : index
    %12 = vector.load %arg7[%c0_8, %c0_9, %c0_10] : memref<1x16x24xf32, #tpu.memory_space<vmem>>, vector<1x16x24xf32>
    %13 = vector.shape_cast %12 : vector<1x16x24xf32> to vector<16x24xf32>
    %14 = vector.shape_cast %11 : vector<16x24xf32> to vector<1x16x24xf32>
    tpu.vector_store %arg7[%c0_8, %c0_9, %c0_10], %14 {strides = array<i32>} : memref<1x16x24xf32, #tpu.memory_space<vmem>>, vector<1x16x24xf32>,
    return
  }
  func.func @transform_0(%arg0: i32, %arg1: i32) -> (i32, i32) {
    %c0_i32 = arith.constant 0 : i32
    %c0_i32_0 = arith.constant 0 : i32
    return %arg0, %c0_i32 : i32, i32
  }
  func.func @transform_1(%arg0: i32, %arg1: i32) -> (i32, i32) {
    %c0_i32 = arith.constant 0 : i32
    %c0_i32_0 = arith.constant 0 : i32
    %c0_i32_1 = arith.constant 0 : i32
    return %c0_i32, %c0_i32_0 : i32, i32
  }
  func.func @transform_2(%arg0: i32, %arg1: i32) -> (i32, i32) {
    %c0_i32 = arith.constant 0 : i32
    %c0_i32_0 = arith.constant 0 : i32
    %c0_i32_1 = arith.constant 0 : i32
    return %c0_i32, %c0_i32_0 : i32, i32
  }
  func.func @transform_3(%arg0: i32, %arg1: i32) -> (i32, i32, i32) {
    %c0_i32 = arith.constant 0 : i32
    %c0_i32_0 = arith.constant 0 : i32
    %c0_i32_1 = arith.constant 0 : i32
    return %arg1, %c0_i32, %c0_i32_0 : i32, i32, i32
  }
  func.func @transform_4(%arg0: i32, %arg1: i32) -> (i32, i32, i32) {
    %c0_i32 = arith.constant 0 : i32
    %c0_i32_0 = arith.constant 0 : i32
    %c0_i32_1 = arith.constant 0 : i32
    return %arg1, %c0_i32, %c0_i32_0 : i32, i32, i32
  }
  func.func @transform_5(%arg0: i32, %arg1: i32) -> (i32, i32, i32) {
    %c0_i32 = arith.constant 0 : i32
    %c0_i32_0 = arith.constant 0 : i32
    return %arg1, %arg0, %c0_i32 : i32, i32, i32
  }
}

module attributes {stable_mosaic.version = 11 : i64} {
  func.func @_attn_proj_res_kernel(%arg0: i32, %arg1: i32, %arg2: memref<1x1x8x24xf32, #tpu.memory_space<vmem>>, %arg3: memref<8x8xf32, #tpu.memory_space<vmem>>, %arg4: memref<8x8xf32, #tpu.memory_space<vmem>>, %arg5: memref<1x8x32xf32, #tpu.memory_space<vmem>>, %arg6: memref<1x32xf32, #tpu.memory_space<vmem>>, %arg7: memref<1x8x32xf32, #tpu.memory_space<vmem>>, %arg8: memref<1x8x32xf32, #tpu.memory_space<vmem>>, %arg9: memref<8x32xf32, #tpu.memory_space<vmem>>) attributes {dimension_semantics = [#tpu.dimension_semantics<parallel>, #tpu.dimension_semantics<arbitrary>], iteration_bounds = array<i64: 2, 4>, scalar_prefetch = 0 : i64, scratch_operands = 1 : i64, tpu.core_type = #tpu.core_type<tc>, window_params = [{transform_indices = @transform_0, window_bounds = array<i64: 1, 1, 8, 24>}, {pipeline_mode = #tpu.pipeline_mode<synchronous>, transform_indices = @transform_1, window_bounds = array<i64: 8, 8>}, {pipeline_mode = #tpu.pipeline_mode<synchronous>, transform_indices = @transform_2, window_bounds = array<i64: 8, 8>}, {transform_indices = @transform_3, window_bounds = array<i64: 1, 8, 32>}, {pipeline_mode = #tpu.pipeline_mode<synchronous>, transform_indices = @transform_4, window_bounds = array<i64: 1, 32>}, {transform_indices = @transform_5, window_bounds = array<i64: 1, 8, 32>}, {transform_indices = @transform_6, window_bounds = array<i64: 1, 8, 32>}]} {
    %c0_i32 = arith.constant 0 : i32
    %0 = arith.cmpi eq, %arg1, %c0_i32 : i32
    %1 = arith.extui %0 : i1 to i32
    %c0_i32_0 = arith.constant 0 : i32
    %2 = arith.cmpi ne, %1, %c0_i32_0 : i32
    scf.if %2 {
      %c0_21 = arith.constant 0 : index
      %c0_22 = arith.constant 0 : index
      %c0_23 = arith.constant 0 : index
      %51 = vector.load %arg7[%c0_21, %c0_22, %c0_23] : memref<1x8x32xf32, #tpu.memory_space<vmem>>, vector<1x8x32xf32>
      %52 = vector.shape_cast %51 : vector<1x8x32xf32> to vector<8x32xf32>
      %c0_24 = arith.constant 0 : index
      %c0_25 = arith.constant 0 : index
      %53 = vector.load %arg6[%c0_24, %c0_25] : memref<1x32xf32, #tpu.memory_space<vmem>>, vector<1x32xf32>
      %54 = vector.broadcast %53 : vector<1x32xf32> to vector<8x32xf32>
      %55 = arith.addf %52, %54 : vector<8x32xf32>
      %c0_26 = arith.constant 0 : index
      %c0_27 = arith.constant 0 : index
      %56 = vector.load %arg9[%c0_26, %c0_27] : memref<8x32xf32, #tpu.memory_space<vmem>>, vector<8x32xf32>
      tpu.vector_store %arg9[%c0_26, %c0_27], %55 {strides = array<i32>} : memref<8x32xf32, #tpu.memory_space<vmem>>, vector<8x32xf32>,
    } else {
    }
    %c0 = arith.constant 0 : index
    %c0_1 = arith.constant 0 : index
    %c0_2 = arith.constant 0 : index
    %c0_3 = arith.constant 0 : index
    %3 = vector.load %arg2[%c0, %c0_1, %c0_2, %c0_3] : memref<1x1x8x24xf32, #tpu.memory_space<vmem>>, vector<1x1x8x24xf32>
    %4 = vector.shape_cast %3 : vector<1x1x8x24xf32> to vector<8x24xf32>
    %5 = vector.extract_strided_slice %4 {offsets = [0, 0], sizes = [8, 8], strides = [1, 1]} : vector<8x24xf32> to vector<8x8xf32>
    %6 = vector.extract_strided_slice %4 {offsets = [0, 8], sizes = [8, 8], strides = [1, 1]} : vector<8x24xf32> to vector<8x8xf32>
    %7 = vector.extract_strided_slice %4 {offsets = [0, 16], sizes = [8, 8], strides = [1, 1]} : vector<8x24xf32> to vector<8x8xf32>
    %c0_4 = arith.constant 0 : index
    %c0_5 = arith.constant 0 : index
    %8 = vector.load %arg3[%c0_4, %c0_5] : memref<8x8xf32, #tpu.memory_space<vmem>>, vector<8x8xf32>
    %c0_6 = arith.constant 0 : index
    %c0_7 = arith.constant 0 : index
    %9 = vector.load %arg4[%c0_6, %c0_7] : memref<8x8xf32, #tpu.memory_space<vmem>>, vector<8x8xf32>
    %10 = vector.extract_strided_slice %5 {offsets = [0, 4], sizes = [8, 4], strides = [1, 1]} : vector<8x8xf32> to vector<8x4xf32>
    %11 = vector.extract_strided_slice %5 {offsets = [0, 0], sizes = [8, 4], strides = [1, 1]} : vector<8x8xf32> to vector<8x4xf32>
    %12 = tpu.concatenate %10, %11 in 1 : vector<8x4xf32>, vector<8x4xf32> -> vector<8x8xf32>
    %13 = arith.mulf %5, %8 : vector<8x8xf32>
    %14 = arith.mulf %12, %9 : vector<8x8xf32>
    %15 = arith.addf %13, %14 : vector<8x8xf32>
    %16 = vector.extract_strided_slice %6 {offsets = [0, 4], sizes = [8, 4], strides = [1, 1]} : vector<8x8xf32> to vector<8x4xf32>
    %17 = vector.extract_strided_slice %6 {offsets = [0, 0], sizes = [8, 4], strides = [1, 1]} : vector<8x8xf32> to vector<8x4xf32>
    %18 = tpu.concatenate %16, %17 in 1 : vector<8x4xf32>, vector<8x4xf32> -> vector<8x8xf32>
    %19 = arith.mulf %6, %8 : vector<8x8xf32>
    %20 = arith.mulf %18, %9 : vector<8x8xf32>
    %21 = arith.addf %19, %20 : vector<8x8xf32>
    %22 = arith.truncf %15 : vector<8x8xf32> to vector<8x8xbf16>
    %23 = arith.truncf %21 : vector<8x8xf32> to vector<8x8xbf16>
    %cst = arith.constant dense<0.000000e+00> : vector<8x8xf32>
    %24 = tpu.matmul %22, %23, %cst {dimension_numbers = #tpu.dot_dimension_numbers<[1], [1], [0], [0], [0, 0, 1, 0], [], []>} : vector<8x8xbf16>, vector<8x8xbf16>, vector<8x8xf32> -> vector<8x8xf32>
    %cst_8 = arith.constant 0.353553385 : f32
    %25 = vector.broadcast %cst_8 : f32 to vector<8x8xf32>
    %26 = arith.mulf %24, %25 : vector<8x8xf32>
    %cst_9 = arith.constant dense<0xFF800000> : vector<8xf32>
    %27 = vector.multi_reduction <maximumf>, %26, %cst_9 [1] : vector<8x8xf32> to vector<8xf32>
    %28 = vector.shape_cast %27 : vector<8xf32> to vector<8x1xf32>
    %29 = vector.broadcast %28 : vector<8x1xf32> to vector<8x8xf32>
    %30 = arith.subf %26, %29 : vector<8x8xf32>
    %31 = math.exp %30 : vector<8x8xf32>
    %cst_10 = arith.constant dense<0.000000e+00> : vector<8xf32>
    %32 = vector.multi_reduction <add>, %31, %cst_10 [1] : vector<8x8xf32> to vector<8xf32>
    %33 = vector.shape_cast %32 : vector<8xf32> to vector<8x1xf32>
    %34 = tpu.reciprocal %33 {approx = true} : vector<8x1xf32> -> vector<8x1xf32>
    %35 = vector.broadcast %34 : vector<8x1xf32> to vector<8x8xf32>
    %36 = arith.mulf %31, %35 : vector<8x8xf32>
    %37 = arith.truncf %36 : vector<8x8xf32> to vector<8x8xbf16>
    %38 = arith.truncf %7 : vector<8x8xf32> to vector<8x8xbf16>
    %cst_11 = arith.constant dense<0.000000e+00> : vector<8x8xf32>
    %39 = tpu.matmul %37, %38, %cst_11 {dimension_numbers = #tpu.dot_dimension_numbers<[1], [0], [0], [1], [0, 0, 1, 1], [], []>} : vector<8x8xbf16>, vector<8x8xbf16>, vector<8x8xf32> -> vector<8x8xf32>
    %c0_12 = arith.constant 0 : index
    %c0_13 = arith.constant 0 : index
    %40 = vector.load %arg9[%c0_12, %c0_13] : memref<8x32xf32, #tpu.memory_space<vmem>>, vector<8x32xf32>
    %41 = arith.truncf %39 : vector<8x8xf32> to vector<8x8xbf16>
    %c0_14 = arith.constant 0 : index
    %c0_15 = arith.constant 0 : index
    %c0_16 = arith.constant 0 : index
    %42 = vector.load %arg5[%c0_14, %c0_15, %c0_16] : memref<1x8x32xf32, #tpu.memory_space<vmem>>, vector<1x8x32xf32>
    %43 = vector.shape_cast %42 : vector<1x8x32xf32> to vector<8x32xf32>
    %44 = arith.truncf %43 : vector<8x32xf32> to vector<8x32xbf16>
    %cst_17 = arith.constant dense<0.000000e+00> : vector<8x32xf32>
    %45 = tpu.matmul %41, %44, %cst_17 {dimension_numbers = #tpu.dot_dimension_numbers<[1], [0], [0], [1], [0, 0, 1, 1], [], []>} : vector<8x8xbf16>, vector<8x32xbf16>, vector<8x32xf32> -> vector<8x32xf32>
    %46 = arith.addf %40, %45 : vector<8x32xf32>
    %c0_18 = arith.constant 0 : index
    %c0_19 = arith.constant 0 : index
    %47 = vector.load %arg9[%c0_18, %c0_19] : memref<8x32xf32, #tpu.memory_space<vmem>>, vector<8x32xf32>
    tpu.vector_store %arg9[%c0_18, %c0_19], %46 {strides = array<i32>} : memref<8x32xf32, #tpu.memory_space<vmem>>, vector<8x32xf32>,
    %c3_i32 = arith.constant 3 : i32
    %48 = arith.cmpi eq, %arg1, %c3_i32 : i32
    %49 = arith.extui %48 : i1 to i32
    %c0_i32_20 = arith.constant 0 : i32
    %50 = arith.cmpi ne, %49, %c0_i32_20 : i32
    scf.if %50 {
      %c0_21 = arith.constant 0 : index
      %c0_22 = arith.constant 0 : index
      %51 = vector.load %arg9[%c0_21, %c0_22] : memref<8x32xf32, #tpu.memory_space<vmem>>, vector<8x32xf32>
      %c0_23 = arith.constant 0 : index
      %c0_24 = arith.constant 0 : index
      %c0_25 = arith.constant 0 : index
      %52 = vector.load %arg8[%c0_23, %c0_24, %c0_25] : memref<1x8x32xf32, #tpu.memory_space<vmem>>, vector<1x8x32xf32>
      %53 = vector.shape_cast %52 : vector<1x8x32xf32> to vector<8x32xf32>
      %54 = vector.shape_cast %51 : vector<8x32xf32> to vector<1x8x32xf32>
      tpu.vector_store %arg8[%c0_23, %c0_24, %c0_25], %54 {strides = array<i32>} : memref<1x8x32xf32, #tpu.memory_space<vmem>>, vector<1x8x32xf32>,
    } else {
    }
    return
  }
  func.func @transform_0(%arg0: i32, %arg1: i32) -> (i32, i32, i32, i32) {
    %c0_i32 = arith.constant 0 : i32
    %c0_i32_0 = arith.constant 0 : i32
    %c0_i32_1 = arith.constant 0 : i32
    return %arg1, %arg0, %c0_i32, %c0_i32_0 : i32, i32, i32, i32
  }
  func.func @transform_1(%arg0: i32, %arg1: i32) -> (i32, i32) {
    %c0_i32 = arith.constant 0 : i32
    %c0_i32_0 = arith.constant 0 : i32
    %c0_i32_1 = arith.constant 0 : i32
    return %c0_i32, %c0_i32_0 : i32, i32
  }
  func.func @transform_2(%arg0: i32, %arg1: i32) -> (i32, i32) {
    %c0_i32 = arith.constant 0 : i32
    %c0_i32_0 = arith.constant 0 : i32
    %c0_i32_1 = arith.constant 0 : i32
    return %c0_i32, %c0_i32_0 : i32, i32
  }
  func.func @transform_3(%arg0: i32, %arg1: i32) -> (i32, i32, i32) {
    %c0_i32 = arith.constant 0 : i32
    %c0_i32_0 = arith.constant 0 : i32
    %c0_i32_1 = arith.constant 0 : i32
    return %arg1, %c0_i32, %c0_i32_0 : i32, i32, i32
  }
  func.func @transform_4(%arg0: i32, %arg1: i32) -> (i32, i32) {
    %c0_i32 = arith.constant 0 : i32
    %c0_i32_0 = arith.constant 0 : i32
    %c0_i32_1 = arith.constant 0 : i32
    return %c0_i32, %c0_i32_0 : i32, i32
  }
  func.func @transform_5(%arg0: i32, %arg1: i32) -> (i32, i32, i32) {
    %c0_i32 = arith.constant 0 : i32
    %c0_i32_0 = arith.constant 0 : i32
    %c0_i32_1 = arith.constant 0 : i32
    return %arg0, %c0_i32, %c0_i32_0 : i32, i32, i32
  }
  func.func @transform_6(%arg0: i32, %arg1: i32) -> (i32, i32, i32) {
    %c0_i32 = arith.constant 0 : i32
    %c0_i32_0 = arith.constant 0 : i32
    %c0_i32_1 = arith.constant 0 : i32
    return %arg0, %c0_i32, %c0_i32_0 : i32, i32, i32
  }
}

module attributes {stable_mosaic.version = 11 : i64} {
  func.func @_ln_mlp_res_kernel(%arg0: i32, %arg1: i32, %arg2: memref<16x32xf32, #tpu.memory_space<vmem>>, %arg3: memref<1x32xf32, #tpu.memory_space<vmem>>, %arg4: memref<1x32xf32, #tpu.memory_space<vmem>>, %arg5: memref<32x128xf32, #tpu.memory_space<vmem>>, %arg6: memref<1x128xf32, #tpu.memory_space<vmem>>, %arg7: memref<128x32xf32, #tpu.memory_space<vmem>>, %arg8: memref<1x32xf32, #tpu.memory_space<vmem>>, %arg9: memref<16x32xf32, #tpu.memory_space<vmem>>, %arg10: memref<16x32xbf16, #tpu.memory_space<vmem>>, %arg11: memref<16x32xf32, #tpu.memory_space<vmem>>) attributes {dimension_semantics = [#tpu.dimension_semantics<parallel>, #tpu.dimension_semantics<arbitrary>], iteration_bounds = array<i64: 1, 1>, scalar_prefetch = 0 : i64, scratch_operands = 2 : i64, tpu.core_type = #tpu.core_type<tc>, window_params = [{transform_indices = @transform_0, window_bounds = array<i64: 16, 32>}, {pipeline_mode = #tpu.pipeline_mode<synchronous>, transform_indices = @transform_1, window_bounds = array<i64: 1, 32>}, {pipeline_mode = #tpu.pipeline_mode<synchronous>, transform_indices = @transform_2, window_bounds = array<i64: 1, 32>}, {transform_indices = @transform_3, window_bounds = array<i64: 32, 128>}, {transform_indices = @transform_4, window_bounds = array<i64: 1, 128>}, {transform_indices = @transform_5, window_bounds = array<i64: 128, 32>}, {pipeline_mode = #tpu.pipeline_mode<synchronous>, transform_indices = @transform_6, window_bounds = array<i64: 1, 32>}, {transform_indices = @transform_7, window_bounds = array<i64: 16, 32>}]} {
    %c0_i32 = arith.constant 0 : i32
    %0 = arith.cmpi eq, %arg1, %c0_i32 : i32
    %1 = arith.extui %0 : i1 to i32
    %c0_i32_0 = arith.constant 0 : i32
    %2 = arith.cmpi ne, %1, %c0_i32_0 : i32
    scf.if %2 {
      %c0_19 = arith.constant 0 : index
      %c0_20 = arith.constant 0 : index
      %33 = vector.load %arg2[%c0_19, %c0_20] : memref<16x32xf32, #tpu.memory_space<vmem>>, vector<16x32xf32>
      %cst_21 = arith.constant dense<0.000000e+00> : vector<16xf32>
      %34 = vector.multi_reduction <add>, %33, %cst_21 [1] : vector<16x32xf32> to vector<16xf32>
      %35 = vector.shape_cast %34 : vector<16xf32> to vector<16x1xf32>
      %cst_22 = arith.constant 3.200000e+01 : f32
      %36 = vector.broadcast %cst_22 : f32 to vector<16x1xf32>
      %37 = arith.divf %35, %36 : vector<16x1xf32>
      %38 = vector.broadcast %37 : vector<16x1xf32> to vector<16x32xf32>
      %39 = arith.subf %33, %38 : vector<16x32xf32>
      %40 = arith.mulf %39, %39 : vector<16x32xf32>
      %cst_23 = arith.constant dense<0.000000e+00> : vector<16xf32>
      %41 = vector.multi_reduction <add>, %40, %cst_23 [1] : vector<16x32xf32> to vector<16xf32>
      %42 = vector.shape_cast %41 : vector<16xf32> to vector<16x1xf32>
      %cst_24 = arith.constant 3.200000e+01 : f32
      %43 = vector.broadcast %cst_24 : f32 to vector<16x1xf32>
      %44 = arith.divf %42, %43 : vector<16x1xf32>
      %45 = vector.broadcast %37 : vector<16x1xf32> to vector<16x32xf32>
      %46 = arith.subf %33, %45 : vector<16x32xf32>
      %cst_25 = arith.constant 9.99999974E-6 : f32
      %47 = vector.broadcast %cst_25 : f32 to vector<16x1xf32>
      %48 = arith.addf %44, %47 : vector<16x1xf32>
      %49 = math.rsqrt %48 : vector<16x1xf32>
      %50 = vector.broadcast %49 : vector<16x1xf32> to vector<16x32xf32>
      %51 = arith.mulf %46, %50 : vector<16x32xf32>
      %c0_26 = arith.constant 0 : index
      %c0_27 = arith.constant 0 : index
      %52 = vector.load %arg3[%c0_26, %c0_27] : memref<1x32xf32, #tpu.memory_space<vmem>>, vector<1x32xf32>
      %53 = vector.broadcast %52 : vector<1x32xf32> to vector<16x32xf32>
      %54 = arith.mulf %51, %53 : vector<16x32xf32>
      %c0_28 = arith.constant 0 : index
      %c0_29 = arith.constant 0 : index
      %55 = vector.load %arg4[%c0_28, %c0_29] : memref<1x32xf32, #tpu.memory_space<vmem>>, vector<1x32xf32>
      %56 = vector.broadcast %55 : vector<1x32xf32> to vector<16x32xf32>
      %57 = arith.addf %54, %56 : vector<16x32xf32>
      %58 = arith.truncf %57 : vector<16x32xf32> to vector<16x32xbf16>
      %c0_30 = arith.constant 0 : index
      %c0_31 = arith.constant 0 : index
      %59 = vector.load %arg10[%c0_30, %c0_31] : memref<16x32xbf16, #tpu.memory_space<vmem>>, vector<16x32xbf16>
      tpu.vector_store %arg10[%c0_30, %c0_31], %58 {strides = array<i32>} : memref<16x32xbf16, #tpu.memory_space<vmem>>, vector<16x32xbf16>,
      %c0_32 = arith.constant 0 : index
      %c0_33 = arith.constant 0 : index
      %60 = vector.load %arg8[%c0_32, %c0_33] : memref<1x32xf32, #tpu.memory_space<vmem>>, vector<1x32xf32>
      %61 = vector.broadcast %60 : vector<1x32xf32> to vector<16x32xf32>
      %62 = arith.addf %33, %61 : vector<16x32xf32>
      %c0_34 = arith.constant 0 : index
      %c0_35 = arith.constant 0 : index
      %63 = vector.load %arg11[%c0_34, %c0_35] : memref<16x32xf32, #tpu.memory_space<vmem>>, vector<16x32xf32>
      tpu.vector_store %arg11[%c0_34, %c0_35], %62 {strides = array<i32>} : memref<16x32xf32, #tpu.memory_space<vmem>>, vector<16x32xf32>,
    } else {
    }
    %c0 = arith.constant 0 : index
    %c0_1 = arith.constant 0 : index
    %3 = vector.load %arg10[%c0, %c0_1] : memref<16x32xbf16, #tpu.memory_space<vmem>>, vector<16x32xbf16>
    %c0_2 = arith.constant 0 : index
    %c0_3 = arith.constant 0 : index
    %4 = vector.load %arg5[%c0_2, %c0_3] : memref<32x128xf32, #tpu.memory_space<vmem>>, vector<32x128xf32>
    %5 = arith.truncf %4 : vector<32x128xf32> to vector<32x128xbf16>
    %cst = arith.constant dense<0.000000e+00> : vector<16x128xf32>
    %6 = tpu.matmul %3, %5, %cst {dimension_numbers = #tpu.dot_dimension_numbers<[1], [0], [0], [1], [0, 0, 1, 1], [], []>} : vector<16x32xbf16>, vector<32x128xbf16>, vector<16x128xf32> -> vector<16x128xf32>
    %c0_4 = arith.constant 0 : index
    %c0_5 = arith.constant 0 : index
    %7 = vector.load %arg6[%c0_4, %c0_5] : memref<1x128xf32, #tpu.memory_space<vmem>>, vector<1x128xf32>
    %8 = vector.broadcast %7 : vector<1x128xf32> to vector<16x128xf32>
    %9 = arith.addf %6, %8 : vector<16x128xf32>
    %cst_6 = arith.constant 5.000000e-01 : f32
    %10 = vector.broadcast %cst_6 : f32 to vector<16x128xf32>
    %11 = arith.mulf %10, %9 : vector<16x128xf32>
    %cst_7 = arith.constant 4.471500e-02 : f32
    %12 = vector.broadcast %cst_7 : f32 to vector<16x128xf32>
    %13 = arith.mulf %12, %9 : vector<16x128xf32>
    %14 = arith.mulf %13, %9 : vector<16x128xf32>
    %15 = arith.mulf %14, %9 : vector<16x128xf32>
    %16 = arith.addf %9, %15 : vector<16x128xf32>
    %cst_8 = arith.constant 0.797884583 : f32
    %17 = vector.broadcast %cst_8 : f32 to vector<16x128xf32>
    %18 = arith.mulf %17, %16 : vector<16x128xf32>
    %19 = math.tanh %18 : vector<16x128xf32>
    %cst_9 = arith.constant 1.000000e+00 : f32
    %20 = vector.broadcast %cst_9 : f32 to vector<16x128xf32>
    %21 = arith.addf %20, %19 : vector<16x128xf32>
    %22 = arith.mulf %11, %21 : vector<16x128xf32>
    %c0_10 = arith.constant 0 : index
    %c0_11 = arith.constant 0 : index
    %23 = vector.load %arg11[%c0_10, %c0_11] : memref<16x32xf32, #tpu.memory_space<vmem>>, vector<16x32xf32>
    %24 = arith.truncf %22 : vector<16x128xf32> to vector<16x128xbf16>
    %c0_12 = arith.constant 0 : index
    %c0_13 = arith.constant 0 : index
    %25 = vector.load %arg7[%c0_12, %c0_13] : memref<128x32xf32, #tpu.memory_space<vmem>>, vector<128x32xf32>
    %26 = arith.truncf %25 : vector<128x32xf32> to vector<128x32xbf16>
    %cst_14 = arith.constant dense<0.000000e+00> : vector<16x32xf32>
    %27 = tpu.matmul %24, %26, %cst_14 {dimension_numbers = #tpu.dot_dimension_numbers<[1], [0], [0], [1], [0, 0, 1, 1], [], []>} : vector<16x128xbf16>, vector<128x32xbf16>, vector<16x32xf32> -> vector<16x32xf32>
    %28 = arith.addf %23, %27 : vector<16x32xf32>
    %c0_15 = arith.constant 0 : index
    %c0_16 = arith.constant 0 : index
    %29 = vector.load %arg11[%c0_15, %c0_16] : memref<16x32xf32, #tpu.memory_space<vmem>>, vector<16x32xf32>
    tpu.vector_store %arg11[%c0_15, %c0_16], %28 {strides = array<i32>} : memref<16x32xf32, #tpu.memory_space<vmem>>, vector<16x32xf32>,
    %c0_i32_17 = arith.constant 0 : i32
    %30 = arith.cmpi eq, %arg1, %c0_i32_17 : i32
    %31 = arith.extui %30 : i1 to i32
    %c0_i32_18 = arith.constant 0 : i32
    %32 = arith.cmpi ne, %31, %c0_i32_18 : i32
    scf.if %32 {
      %c0_19 = arith.constant 0 : index
      %c0_20 = arith.constant 0 : index
      %33 = vector.load %arg11[%c0_19, %c0_20] : memref<16x32xf32, #tpu.memory_space<vmem>>, vector<16x32xf32>
      %c0_21 = arith.constant 0 : index
      %c0_22 = arith.constant 0 : index
      %34 = vector.load %arg9[%c0_21, %c0_22] : memref<16x32xf32, #tpu.memory_space<vmem>>, vector<16x32xf32>
      tpu.vector_store %arg9[%c0_21, %c0_22], %33 {strides = array<i32>} : memref<16x32xf32, #tpu.memory_space<vmem>>, vector<16x32xf32>,
    } else {
    }
    return
  }
  func.func @transform_0(%arg0: i32, %arg1: i32) -> (i32, i32) {
    %c0_i32 = arith.constant 0 : i32
    %c0_i32_0 = arith.constant 0 : i32
    return %arg0, %c0_i32 : i32, i32
  }
  func.func @transform_1(%arg0: i32, %arg1: i32) -> (i32, i32) {
    %c0_i32 = arith.constant 0 : i32
    %c0_i32_0 = arith.constant 0 : i32
    %c0_i32_1 = arith.constant 0 : i32
    return %c0_i32, %c0_i32_0 : i32, i32
  }
  func.func @transform_2(%arg0: i32, %arg1: i32) -> (i32, i32) {
    %c0_i32 = arith.constant 0 : i32
    %c0_i32_0 = arith.constant 0 : i32
    %c0_i32_1 = arith.constant 0 : i32
    return %c0_i32, %c0_i32_0 : i32, i32
  }
  func.func @transform_3(%arg0: i32, %arg1: i32) -> (i32, i32) {
    %c0_i32 = arith.constant 0 : i32
    %c0_i32_0 = arith.constant 0 : i32
    return %c0_i32, %arg1 : i32, i32
  }
  func.func @transform_4(%arg0: i32, %arg1: i32) -> (i32, i32) {
    %c0_i32 = arith.constant 0 : i32
    %c0_i32_0 = arith.constant 0 : i32
    return %c0_i32, %arg1 : i32, i32
  }
  func.func @transform_5(%arg0: i32, %arg1: i32) -> (i32, i32) {
    %c0_i32 = arith.constant 0 : i32
    %c0_i32_0 = arith.constant 0 : i32
    return %arg1, %c0_i32 : i32, i32
  }
  func.func @transform_6(%arg0: i32, %arg1: i32) -> (i32, i32) {
    %c0_i32 = arith.constant 0 : i32
    %c0_i32_0 = arith.constant 0 : i32
    %c0_i32_1 = arith.constant 0 : i32
    return %c0_i32, %c0_i32_0 : i32, i32
  }
  func.func @transform_7(%arg0: i32, %arg1: i32) -> (i32, i32) {
    %c0_i32 = arith.constant 0 : i32
    %c0_i32_0 = arith.constant 0 : i32
    return %arg0, %c0_i32 : i32, i32
  }
}

</mosaic_0001>

<bundles_post_ra>
// kernel: encoder_block_forward.3
= control target key start
LH: loop header
LB: loop body
LE: loop exit
PB: predicated region body
PF: predicated region fallthrough
CT: control target
= control target key end

     0   :  { %s622_s18 = smov 0   ;;  %s624_s19 = smov 0   ;;  %s695_s0 = inlined_call_operand.vmem [shape: f32[16,32], index: 0, kind: input, shape index: {}]   ;;  %s696_s1 = inlined_call_operand.vmem [shape: f32[1,32], index: 1, kind: input, shape index: {}]   ;;  %s697_s2 = inlined_call_operand.vmem [shape: f32[1,32], index: 2, kind: input, shape index: {}]   ;;  %s698_s3 = inlined_call_operand.vmem [shape: f32[4,32,24], index: 3, kind: input, shape index: {}]   ;;  %s699_s4 = inlined_call_operand.vmem [shape: f32[4,1,24], index: 4, kind: input, shape index: {}]   ;;  %s700_s5 = inlined_call_operand.vmem [shape: f32[4,16,24], index: 5, kind: output, shape index: {}]  }
   0x1   :  { %s626_s20 = smov 0  }
   0x2 LB: > { %s24_s21 = sadd.s32 1, %s584_s19  ;;  %p511_p0 = scmp.ge.s32.totalorder %s588_s20, 1  ;;  %s588_s20 = sphi %s626_s20, %s15_s20   ;;  %s584_s19 = sphi %s624_s19, %s702_s19   ;;  %s580_s18 = sphi %s622_s18, %s701_s18  }
   0x3   : > { %p25_p1 = scmp.ge.s32.totalorder %s24_s21, 4  ;;  %p220_p2 = scmp.lt.s32.totalorder %s588_s20, 5 }
   0x5   : > { %s704_s21 = smov (%p25_p1, %s24_s21), 0  ;;  %p221_p3 = pnand %p511_p0, %p220_p2 }
   0x6   : > { %p266_p4 = scmp.lt.s32.totalorder (!%p221_p3), %s580_s18, 3  ;;  %p516_p5 = scmp.ne.s32.totalorder (!%p221_p3), %s580_s18, 0 }
   0x7   : > { %224 = sbr.rel (%p221_p3) target bundleno = 563 (0x233), region = 40 }
   0xe   : > { %s640_s22 = scalar_select %p266_p4, %s580_s18, 3 }
   0xf   : > { %288 = sbr.rel (%p516_p5) target bundleno = 336 (0x150), region = 44  ;;  %v289_v0 = vld [vmem:[%s695_s0] sm:$0xff] (!%p516_p5)  ;;  %vm291_vm0 = vcmask (!%p516_p5), 261120   ;;  %v290_v1 = vld [vmem:[%s695_s0 + $0x8] sm:$0xff] (!%p516_p5) }
  0x10   : > { %s523_s23 = sshll.u32 %s640_s22, 5  ;;  %s273_s26 = scalar_lea.vmem %s699_s4, %s640_s22  ;;  %v292_v2 = vsel (!%p516_p5), %vm291_vm0, %v289_v0, 0.0  ;;  %v295_v3 = vsel (!%p516_p5), %vm291_vm0, %v290_v1, 0.0  ;;  %v517_v22 = vld [vmem:[%s696_s1] ss:$0 sm:$0xff] (!%p516_p5) }
  0x11   : > { %s650_s29 = scalar_lea.vmem %s698_s3, %s523_s23  ;;  %s524_s30 = sshll.u32 %s640_s22, 4  ;;  %293 = vadd.xlane.f32.xlu0 (!%p516_p5), %v292_v2  ;;  %v518_v26 = vld [vmem:[%s697_s2] ss:$0 sm:$0xff] (!%p516_p5) }
  0x12   : > { %s656_s8 = scalar_lea.vmem %s700_s5, %s524_s30 }
  0x15   : > { %296 = vadd.xlane.f32.xlu0 (!%p516_p5), %v295_v3 }
  0x9e   : > { %v294_v4 = vpop.xlane.xlu0 %293 }
  0x9f   : > { %v299_v5 = vmul.f32 0.03125, %v294_v4 }
  0xa1   : > { %v301_v6 = vsub.f32 %v289_v0, %v299_v5 }
  0xa2   : > { %v297_v7 = vpop.xlane.xlu0 %296 }
  0xa3   : > { %v300_v8 = vmul.f32 0.03125, %v297_v7  ;;  %v303_v9 = vmul.f32 %v301_v6, %v301_v6 }
  0xa5   : > { %v302_v10 = vsub.f32 %v290_v1, %v300_v8  ;;  %v305_v11 = vsel %vm291_vm0, %v303_v9, 0.0 }
  0xa6   : > { %306 = vadd.xlane.f32.xlu1 %v305_v11 }
  0xa7   : > { %v304_v12 = vmul.f32 %v302_v10, %v302_v10 }
  0xa9   : > { %v308_v13 = vsel %vm291_vm0, %v304_v12, 0.0 }
  0xaa   : > { %309 = vadd.xlane.f32.xlu1 %v308_v13 }
 0x133   : > { %v307_v14 = vpop.xlane.xlu1 %306 }
 0x134   : > { %v311_v15 = vmul.f32 0.03125, %v307_v14 }
 0x136   : > { %v313_v16 = vadd.f32 1e-05, %v311_v15 }
 0x137   : > { %v310_v17 = vpop.xlane.xlu1 %309 }
 0x138   : > { %562 = vrsqrt.f32 %v313_v16  ;;  %v312_v18 = vmul.f32 0.03125, %v310_v17 }
 0x13a   : > { %v314_v19 = vadd.f32 1e-05, %v312_v18 }
 0x13c   : > { %564 = vrsqrt.f32 %v314_v19 }
 0x142   : > { %v563_v20 = vpop.eup %562 }
 0x143   : > { %v317_v21 = vmul.f32 %v563_v20, %v301_v6 }
 0x145   : > { %v326_v24 = vmul.f32 %v517_v22, %v317_v21 }
 0x146   : > { %v565_v23 = vpop.eup %564 }
 0x147   : > { %v318_v25 = vmul.f32 %v565_v23, %v302_v10  ;;  %v335_v28 = vadd.f32 %v518_v26, %v326_v24 }
 0x149   : > { %v327_v27 = vmul.f32 %v517_v22, %v318_v25 }
 0x14b   : > { %v336_v29 = vadd.f32 %v518_v26, %v327_v27 }
 0x14d   : > { %v337_v30 = vpack.c.bf16 %v336_v29, %v335_v28 }
 0x14f   : > { %338 = vst.msk [vmem:[#allocation2] sm:$0xff] %vm291_vm0, %v337_v30 }
 0x150 PF: > { %v340_v31 = vld [vmem:[%s650_s29] sm:$0xff]  ;;  %v341_v32 = vld [vmem:[%s650_s29 + $0x8] sm:$0xff]  ;;  %v342_v33 = vld [vmem:[%s650_s29 + $0x10] sm:$0xff]  ;;  %v590_v34 = vmov 0.0   ;;  %vm591_vm1 = vmmov 0   ;;  %vm353_vm2 = vcmask 261120  }
 0x151   : > { %528 = vmatprep.subr.bf16.mxu0 %v590_v34  ;;  %v344_v35 = vpack.c.bf16 %v341_v32, %v340_v31  ;;  %v343_v36 = vld [vmem:[%s650_s29 + $0x18] sm:$0xff]  ;;  %532 = vmatprep.mubr.msk.bf16.mxu0 %vm591_vm1, %v590_v34  ;;  %v519_v39 = vld [vmem:[%s273_s26] ss:$0 sm:$0xff]  ;;  %vm398_vm3 = vcmask 195584  }
 0x152   : > { %v345_v37 = vpack.c.bf16 %v343_v36, %v342_v33 }
 0x153   : > { %529 = vmatpush3.bf16.msra.mxu0 %v344_v35 }
 0x154   : > { %530 = vmatprep.subr.bf16.mxu0 %v590_v34 }
 0x156   : > { %v339_v38 = vld [vmem:[#allocation2] sm:$0xff] }
 0x157   : > { %531 = vmatpush3.bf16.msra.mxu0 %v345_v37 }
 0x15a   : > { %533 = vmatmul.mubr.msk.bf16.vlgmr.msra.gmra.mrb[0].mxu0 %vm353_vm2, %v339_v38 }
 0x22d   : > { %v391_v40 = vpop.f32.mrb[0].mxu0 }
 0x22e   : > { %v392_v41 = vadd.f32 %v519_v39, %v391_v40  ;;  %v534_v42 = vpop.f32.mrb[1].mxu0 }
 0x22f   : > { %v394_v43 = vpop.f32.mrb[2].mxu0 }
 0x230   : > { %399 = vst.msk [vmem:[%s656_s8] sm:$0xff] %vm398_vm3, %v392_v41  ;;  %v395_v44 = vadd.f32 %v519_v39, %v394_v43  ;;  %v535_v45 = vpop.f32.mrb[3].mxu0 }
 0x232   : > { %400 = vst.msk [vmem:[%s656_s8 + $0x8] sm:$0xff] %vm398_vm3, %v395_v44 }
 0x233 PF: > { %s15_s20 = sadd.s32 1, %s588_s20   ;;  %s701_s18 = smov %s584_s19 }
 0x234   : > { %p12_p6 = scmp.ge.s32.totalorder %s15_s20, 6   ;;  %s702_s19 = smov %s704_s21 }
 0x236   :  { %14 = sbr.rel (!%p12_p6) target bundleno = 2 (0x2), region = 80 }

// kernel: encoder_block_forward.4
= control target key start
LH: loop header
LB: loop body
LE: loop exit
PB: predicated region body
PF: predicated region fallthrough
CT: control target
= control target key end

     0   :  { %s799_s21 = smov 0   ;;  %s801_s22 = smov 0   ;;  %s888_s0 = inlined_call_operand.vmem [shape: f32[4,2,8,24], index: 0, kind: input, shape index: {}]   ;;  %s889_s1 = inlined_call_operand.vmem [shape: f32[8,8], index: 1, kind: input, shape index: {}]   ;;  %s890_s2 = inlined_call_operand.vmem [shape: f32[8,8], index: 2, kind: input, shape index: {}]   ;;  %s891_s3 = inlined_call_operand.vmem [shape: f32[4,8,32], index: 3, kind: input, shape index: {}]   ;;  %s892_s4 = inlined_call_operand.vmem [shape: f32[1,32], index: 4, kind: input, shape index: {}]   ;;  %s893_s5 = inlined_call_operand.vmem [shape: f32[2,8,32], index: 5, kind: input, shape index: {}]   ;;  %s894_s6 = inlined_call_operand.vmem [shape: f32[2,8,32], index: 6, kind: output, shape index: {}]  }
   0x1   :  { %s803_s23 = smov 0   ;;  %s805_s24 = smov 0  }
   0x2   :  { %s807_s25 = smov 0  }
   0x3 LB: > { %s25_s26 = sadd.s32 1, %s746_s23  ;;  %s28_s27 = sadd.s32 1, %s750_s24  ;;  %s754_s25 = sphi %s807_s25, %s16_s25   ;;  %s750_s24 = sphi %s805_s24, %s898_s24   ;;  %s746_s23 = sphi %s803_s23, %s897_s23   ;;  %s742_s22 = sphi %s801_s22, %s896_s22   ;;  %s738_s21 = sphi %s799_s21, %s895_s21  }
   0x4   : > { %p26_p0 = scmp.ge.s32.totalorder %s25_s26, 4  ;;  %p626_p1 = scmp.ge.s32.totalorder %s754_s25, 1 }
   0x5   : > { %p247_p2 = scmp.lt.s32.totalorder %s754_s25, 9 }
   0x6   : > { %s900_s26 = smov (%p26_p0, %s25_s26), 0  ;;  %s902_s27 = smov (!%p26_p0, %s28_s27), %s750_s24 }
   0x7   : > { %p248_p3 = pnand %p626_p1, %p247_p2  ;;  %p30_p4 = scmp.ge.s32.totalorder %s902_s27, 2 }
   0x8   : > { %p287_p5 = scmp.lt.s32.totalorder (!%p248_p3), %s738_s21, 3  ;;  %p289_p6 = scmp.lt.s32.totalorder (!%p248_p3), %s742_s22, 1 }
   0x9   : > { %s904_s27 = smov (%p30_p4, %s902_s27), 0  ;;  %251 = sbr.rel (%p248_p3) target bundleno = 1358 (0x54e), region = 44 }
   0xa   : > { %p632_p7 = scmp.ne.s32.totalorder (!%p248_p3), %s738_s21, 0 }
  0x10   : > { %s288_s28 = scalar_select %p287_p5, %s738_s21, 3 }
  0x11   : > { %s906_s22 = smov (!%p289_p6, %s742_s22), 1  ;;  %311 = sbr.rel (%p632_p7) target bundleno = 26 (0x1a), region = 48 }
  0x12   : > { %s627_s29 = sshll.u32 %s288_s28, 1  ;;  %s629_s30 = sshll.u32 %s288_s28, 3  ;;  %v633_v1 = vld [vmem:[%s892_s4] ss:$0 sm:$0xff] (!%p632_p7)  ;;  %vm321_vm0 = vcmask (!%p632_p7), 261120  }
  0x13   : > { %s292_s7 = sadd.s32 %s627_s29, %s906_s22  ;;  %s836_s10 = scalar_lea.vmem %s891_s3, %s629_s30 }
  0x14   : > { %s628_s11 = sshll.u32 %s292_s7, 3  ;;  %s630_s12 = sshll.u32 %s906_s22, 3 }
  0x15   : > { %s294_s15 = scalar_lea.vmem %s888_s0, %s628_s11  ;;  %s302_s18 = scalar_lea.vmem %s893_s5, %s630_s12 }
  0x16   : > { %s847_s28 = scalar_lea.vmem %s894_s6, %s630_s12  ;;  %v312_v0 = vld [vmem:[%s302_s18] sm:$0xff] (!%p632_p7) }
  0x17   : > { %v320_v2 = vadd.f32 (!%p632_p7), %v633_v1, %v312_v0 }
  0x19   : > { %322 = vst.msk [vmem:[#allocation2] sm:$0xff] %vm321_vm0, %v320_v2 }
  0x1a PF: > { %v323_v3 = vld [vmem:[%s294_s15] sm:$0xff]  ;;  %s756_s8 = smov 124   ;;  %s757_s9 = smov 8   ;;  %vm333_vm1 = vcmask 31744   ;;  %v760_v10 = vmov 0.0   ;;  %vm761_vm2 = vmmov 0  }
  0x1b   : > { %v324_v4 = vld [vmem:[%s889_s1] sm:$0xff]  ;;  %327 = vrot.lane.b32.xlu0 %v323_v3, %s756_s8  ;;  %s758_s11 = smov 116   ;;  %s759_s14 = smov 4   ;;  %646 = vmatprep.subr.bf16.mxu0 %v760_v10  ;;  %vm358_vm3 = vcmask 64512   ;;  %v418_v30 = vpack.c.bf16 %v323_v3, %v323_v3  ;;  %vm425_vm4 = vcmask 1043456   ;;  %vm520_vm5 = vcmask 261120  }
  0x1c   : > { %343 = vrot.lane.b32.xlu1 %v324_v4, %s757_s9  ;;  %v325_v6 = vld [vmem:[%s890_s2] sm:$0xff]  ;;  %652 = vmatprep.subr.bf16.mxu1 %v760_v10  ;;  %s762_s15 = smov 120   ;;  %v335_v18 = vmul.f32 %v324_v4, %v323_v3  ;;  %s763_s16 = smov 112  }
  0x1d   : > { %648 = vmatprep.mubr.msk.bf16.mxu0 %vm761_vm2, %v760_v10  ;;  %654 = vmatprep.mubr.msk.bf16.mxu1 %vm761_vm2, %v760_v10  ;;  %v471_v39 = vld [vmem:[%s836_s10] sm:$0xff]  ;;  %p637_p8 = scmp.ne.s32.totalorder %s738_s21, 3 }
  0x1e   : > { %v472_v40 = vpack.c.bf16 %v471_v39, %v471_v39 }
  0x1f   : > { %338 = vrot.lane.b32.xlu0 %v323_v3, %s758_s11 }
  0x20   : > { %v477_v43 = vsel %vm425_vm4, %v472_v40, 0  ;;  %v469_v50 = vld [vmem:[#allocation2] sm:$0xff] }
  0x8d   : > { %v328_v5 = vpop.permute.xlu0 %327 }
  0x8e   : > { %v344_v11 = vpop.permute.xlu1 %343 }
  0x8f   : > { %v346_v12 = vmul.f32 %v344_v11, %v323_v3 }
  0x91   : > { %v339_v7 = vpop.permute.xlu0 %338 }
  0x92   : > { %v341_v8 = vsel %vm333_vm1, %v339_v7, %v328_v5 }
  0x93   : > { %v347_v9 = vmul.f32 %v341_v8, %v325_v6 }
  0x95   : > { %349 = vrot.lane.b32.xlu1 %v347_v9, %s757_s9 }
  0x99   : > { %330 = vrot.lane.b32.xlu1 %v323_v3, %s759_s14 }
 0x107   : > { %v350_v13 = vpop.permute.xlu1 %349 }
 0x108   : > { %v352_v14 = vadd.f32 %v350_v13, %v346_v12 }
 0x10a   : > { %v354_v15 = vpack.c.bf16 %v352_v14, %v352_v14 }
 0x10b   : > { %v331_v16 = vpop.permute.xlu1 %330 }
 0x10c   : > { %356 = vrot.lane.b32.xlu0 %v354_v15, %s762_s15  ;;  %v334_v17 = vsel %vm333_vm1, %v328_v5, %v331_v16 }
 0x10d   : > { %v336_v19 = vmul.f32 %v334_v17, %v325_v6 }
 0x10f   : > { %v337_v22 = vadd.f32 %v336_v19, %v335_v18 }
 0x111   : > { %v353_v23 = vpack.c.bf16 %v337_v22, %v337_v22 }
 0x17e   : > { %v357_v20 = vpop.permute.xlu0 %356 }
 0x17f   : > { %v363_v21 = vsel %vm358_vm3, %v357_v20, 0 }
 0x180   : > { %647 = vmatpush3.bf16.xpose.msra.mxu0 %v363_v21 }
 0x187   : > { %649 = vmatmul.mubr.msk.bf16.vlgmr.msra.gmra.mrb[0].mxu0 %vm358_vm3, %v353_v23 }
 0x25a   : > { %v399_v24 = vpop.f32.mrb[0].mxu0 }
 0x25b   : > { %v405_v25 = vmul.f32 0.35355338, %v399_v24  ;;  %v650_v26 = vpop.f32.mrb[1].mxu0 }
 0x25c   : > { %v402_v27 = vpop.f32.mrb[2].mxu0 }
 0x25d   : > { %v651_v28 = vpop.f32.mrb[3].mxu0  ;;  %v406_v29 = vsel %vm358_vm3, %v405_v25, -inf }
 0x25e   : > { %407 = vmax.xlane.f32.xlu0 %v406_v29 }
 0x274   : > { %420 = vrot.lane.b32.xlu0 %v418_v30, %s763_s16 }
 0x2eb   : > { %v408_v31 = vpop.xlane.xlu0 %407 }
 0x2ec   : > { %v409_v32 = vsub.f32 %v405_v25, %v408_v31 }
 0x2ee   : > { %v410_v33 = vmul.f32 1.442695, %v409_v32 }
 0x2ef   : > { %v421_v36 = vpop.permute.xlu0 %420 }
 0x2f0   : > { %712 = vpow2.f32 %v410_v33  ;;  %v427_v37 = vsel %vm425_vm4, %v421_v36, 0 }
 0x2f1   : > { %653 = vmatpush3.bf16.msra.mxu1 %v427_v37 }
 0x2f2   : > { %658 = vmatprep.subr.bf16.mxu1 %v760_v10 }
 0x2fa   : > { %v713_v34 = vpop.eup %712 }
 0x2fb   : > { %v412_v35 = vsel %vm358_vm3, %v713_v34, 0.0 }
 0x2fc   : > { %413 = vadd.xlane.f32.xlu1 %v412_v35 }
 0x389   : > { %v414_v38 = vpop.xlane.xlu1 %413 }
 0x38a   : > { %714 = vrcp.f32 %v414_v38 }
 0x394   : > { %v715_v41 = vpop.eup %714 }
 0x395   : > { %v416_v42 = vmul.f32 %v715_v41, %v713_v34 }
 0x397   : > { %v417_v44 = vpack.c.bf16 %v416_v42, %v416_v42 }
 0x399   : > { %655 = vmatmul.mubr.msk.bf16.vlgmr.msra.gmra.mrb[0].mxu1 %vm358_vm3, %v417_v44 }
 0x39a   : > { %659 = vmatpush3.bf16.msra.mxu1 %v477_v43  ;;  %660 = vmatprep.mubr.msk.bf16.mxu1 %vm761_vm2, %v760_v10 }
 0x46c   : > { %v463_v45 = vpop.f32.mrb[0].mxu1 }
 0x46d   : > { %v470_v46 = vpack.c.bf16 %v463_v45, %v463_v45  ;;  %v656_v47 = vpop.f32.mrb[1].mxu1 }
 0x46e   : > { %v466_v48 = vpop.f32.mrb[2].mxu1 }
 0x46f   : > { %v657_v49 = vpop.f32.mrb[3].mxu1  ;;  %661 = vmatmul.mubr.msk.bf16.vlgmr.msra.gmra.mrb[4].mxu1 %vm358_vm3, %v470_v46 }
 0x53f   : > { %525 = sbr.rel (%p637_p8) target bundleno = 1358 (0x54e), region = 52 }
 0x542   : > { %v513_v51 = vpop.f32.mrb[4].mxu1 }
 0x543   : > { %v519_v52 = vadd.f32 %v513_v51, %v469_v50  ;;  %v662_v53 = vpop.f32.mrb[5].mxu1 }
 0x544   : > { %v516_v54 = vpop.f32.mrb[6].mxu1 }
 0x545   : > { %521 = vst.msk [vmem:[#allocation2] sm:$0xff] %vm520_vm5, %v519_v52  ;;  %v663_v55 = vpop.f32.mrb[7].mxu1 }
 0x54c   : > { %v526_v56 = vld [vmem:[#allocation2] sm:$0xff] }
 0x54d   : > { %527 = vst.msk [vmem:[%s847_s28] sm:$0xff] %vm520_vm5, %v526_v56 }
 0x54e PF: > { %s16_s25 = sadd.s32 1, %s754_s25   ;;  %s895_s21 = smov %s746_s23 }
 0x54f   : > { %p13_p9 = scmp.ge.s32.totalorder %s16_s25, 10   ;;  %s896_s22 = smov %s750_s24 }
 0x550   : > { %s897_s23 = smov %s900_s26  ;;  %s898_s24 = smov %s904_s27 }
 0x551   :  { %15 = sbr.rel (!%p13_p9) target bundleno = 3 (0x3), region = 88 }

// kernel: encoder_block_forward.5
= control target key start
LH: loop header
LB: loop body
LE: loop exit
PB: predicated region body
PF: predicated region fallthrough
CT: control target
= control target key end

     0   :  { %vm34_vm0 = vcmask 261120   ;;  %s506_s0 = inlined_call_operand.vmem [shape: f32[16,32], index: 0, kind: input, shape index: {}]   ;;  %s507_s1 = inlined_call_operand.vmem [shape: f32[1,32], index: 1, kind: input, shape index: {}]   ;;  %s508_s2 = inlined_call_operand.vmem [shape: f32[1,32], index: 2, kind: input, shape index: {}]   ;;  %s509_s3 = inlined_call_operand.vmem [shape: f32[32,128], index: 3, kind: input, shape index: {}]   ;;  %s510_s4 = inlined_call_operand.vmem [shape: f32[1,128], index: 4, kind: input, shape index: {}]   ;;  %s511_s5 = inlined_call_operand.vmem [shape: f32[128,32], index: 5, kind: input, shape index: {}]   ;;  %s512_s6 = inlined_call_operand.vmem [shape: f32[1,32], index: 6, kind: input, shape index: {}]   ;;  %s513_s7 = inlined_call_operand.hbm [shape: f32[16,32], index: 7, kind: output, shape index: {}]  }
   0x1   :  { %v32_v0 = vld [vmem:[%s506_s0] sm:$0xff]  ;;  %v33_v2 = vld [vmem:[%s506_s0 + $0x8] sm:$0xff] }
   0x2   :  { %v267_v1 = vld [vmem:[%s512_s6] ss:$0 sm:$0xff]  ;;  %v35_v3 = vsel %vm34_vm0, %v32_v0, 0.0 }
   0x3   :  { %v89_v4 = vadd.f32 %v267_v1, %v32_v0  ;;  %v90_v5 = vadd.f32 %v267_v1, %v33_v2 }
   0x4   :  { %12 = vsyncpa [#allocation5], 0  ;;  %36 = vadd.xlane.f32.xlu0 %v35_v3  ;;  %v38_v6 = vsel %vm34_vm0, %v33_v2, 0.0  ;;  %v94_v17 = vld [vmem:[%s509_s3] sm:$0xff]  ;;  %v95_v18 = vld [vmem:[%s509_s3 + $0x8] sm:$0xff]  ;;  %v347_v20 = vmov 0.0  }
   0x5   :  { %91 = vst.msk [vmem:[#allocation3] sm:$0xff] %vm34_vm0, %v89_v4  ;;  %92 = vst.msk [vmem:[#allocation3 + $0x8] sm:$0xff] %vm34_vm0, %v90_v5  ;;  %v98_v19 = vpack.c.bf16 %v95_v18, %v94_v17  ;;  %282 = vmatprep.subr.bf16.mxu0 %v347_v20  ;;  %v96_v21 = vld [vmem:[%s509_s3 + $0x10] sm:$0xff]  ;;  %v97_v22 = vld [vmem:[%s509_s3 + $0x18] sm:$0xff]  ;;  %290 = vmatprep.subr.bf16.mxu1 %v347_v20  ;;  %vm348_vm1 = vmmov 0  }
   0x6   :  { %v99_v23 = vpack.c.bf16 %v97_v22, %v96_v21  ;;  %286 = vmatprep.mubr.msk.bf16.mxu0 %vm348_vm1, %v347_v20  ;;  %306 = vmatprep.mubr.msk.bf16.mxu1 %vm348_vm1, %v347_v20  ;;  %v265_v32 = vld [vmem:[%s507_s1] ss:$0 sm:$0xff]  ;;  %v174_v43 = vld [vmem:[%s511_s5 + $0x8] sm:$0xff]  ;;  %v175_v45 = vld [vmem:[%s511_s5 + $0x10] sm:$0xff] }
   0x7   :  { %283 = vmatpush3.bf16.msra.mxu0 %v98_v19  ;;  %v266_v36 = vld [vmem:[%s508_s2] ss:$0 sm:$0xff]  ;;  %v176_v46 = vld [vmem:[%s511_s5 + $0x18] sm:$0xff]  ;;  %v178_v49 = vld [vmem:[%s511_s5 + $0x28] sm:$0xff] }
   0x8   :  { %39 = vadd.xlane.f32.xlu0 %v38_v6  ;;  %284 = vmatprep.subr.bf16.mxu0 %v347_v20  ;;  %v173_v42 = vld [vmem:[%s511_s5] sm:$0xff]  ;;  %v190_v47 = vpack.c.bf16 %v176_v46, %v175_v45  ;;  %v179_v51 = vld [vmem:[%s511_s5 + $0x30] sm:$0xff]  ;;  %v180_v52 = vld [vmem:[%s511_s5 + $0x38] sm:$0xff] }
   0x9   :  { %v189_v44 = vpack.c.bf16 %v174_v43, %v173_v42  ;;  %v177_v48 = vld [vmem:[%s511_s5 + $0x20] sm:$0xff]  ;;  %v192_v53 = vpack.c.bf16 %v180_v52, %v179_v51  ;;  %v182_v55 = vld [vmem:[%s511_s5 + $0x48] sm:$0xff]  ;;  %v183_v57 = vld [vmem:[%s511_s5 + $0x50] sm:$0xff] }
   0xa   :  { %v191_v50 = vpack.c.bf16 %v178_v49, %v177_v48  ;;  %v181_v54 = vld [vmem:[%s511_s5 + $0x40] sm:$0xff]  ;;  %v184_v58 = vld [vmem:[%s511_s5 + $0x58] sm:$0xff]  ;;  %v186_v61 = vld [vmem:[%s511_s5 + $0x68] sm:$0xff] }
   0xb   :  { %285 = vmatpush3.bf16.msra.mxu0 %v99_v23  ;;  %291 = vmatpush3.bf16.msra.mxu1 %v189_v44  ;;  %v193_v56 = vpack.c.bf16 %v182_v55, %v181_v54  ;;  %v194_v59 = vpack.c.bf16 %v184_v58, %v183_v57  ;;  %v185_v60 = vld [vmem:[%s511_s5 + $0x60] sm:$0xff]  ;;  %v187_v63 = vld [vmem:[%s511_s5 + $0x70] sm:$0xff] }
   0xc   :  { %292 = vmatprep.subr.bf16.mxu1 %v347_v20  ;;  %v195_v62 = vpack.c.bf16 %v186_v61, %v185_v60 }
   0xf   :  { %293 = vmatpush3.bf16.msra.mxu1 %v190_v47 }
  0x10   :  { %294 = vmatprep.subr.bf16.mxu1 %v347_v20 }
  0x13   :  { %295 = vmatpush3.bf16.msra.mxu1 %v191_v50 }
  0x14   :  { %296 = vmatprep.subr.bf16.mxu1 %v347_v20 }
  0x17   :  { %297 = vmatpush3.bf16.msra.mxu1 %v192_v53 }
  0x18   :  { %298 = vmatprep.subr.bf16.mxu1 %v347_v20 }
  0x1b   :  { %299 = vmatpush3.bf16.msra.mxu1 %v193_v56 }
  0x1c   :  { %300 = vmatprep.subr.bf16.mxu1 %v347_v20 }
  0x1f   :  { %301 = vmatpush3.bf16.msra.mxu1 %v194_v59 }
  0x20   :  { %302 = vmatprep.subr.bf16.mxu1 %v347_v20 }
  0x23   :  { %303 = vmatpush3.bf16.msra.mxu1 %v195_v62 }
  0x24   :  { %304 = vmatprep.subr.bf16.mxu1 %v347_v20 }
  0x91   :  { %v37_v7 = vpop.xlane.xlu0 %36 }
  0x92   :  { %v42_v8 = vmul.f32 0.03125, %v37_v7 }
  0x94   :  { %v44_v9 = vsub.f32 %v32_v0, %v42_v8  ;;  %v188_v0 = vld [vmem:[%s511_s5 + $0x78] sm:$0xff] }
  0x95   :  { %v40_v10 = vpop.xlane.xlu0 %39  ;;  %v196_v1 = vpack.c.bf16 %v188_v0, %v187_v63 }
  0x96   :  { %v43_v11 = vmul.f32 0.03125, %v40_v10  ;;  %v46_v12 = vmul.f32 %v44_v9, %v44_v9 }
  0x97   :  { %305 = vmatpush3.bf16.msra.mxu1 %v196_v1 }
  0x98   :  { %v45_v13 = vsub.f32 %v33_v2, %v43_v11  ;;  %v48_v14 = vsel %vm34_vm0, %v46_v12, 0.0  ;;  %v268_v2 = vld [vmem:[%s510_s4] ss:$0 sm:$0xff]  ;;  %s349_s4 = smov [#allocation4]  }
  0x99   :  { %49 = vadd.xlane.f32.xlu1 %v48_v14  ;;  %s254_s5 = sshll.u32 %s349_s4, 4  ;;  %s255_s5 = int_to_ptr.vmem [resolvable:$true] %s254_s5 }
  0x9a   :  { %v47_v15 = vmul.f32 %v45_v13, %v45_v13  ;;  %s323_s20 = scalar_lea.vmem %s255_s5, 256  ;;  %p328_p1 = scmp.lt.s32.totalorder %s255_s5, %s255_s5 }
  0x9b   :  { %p324_p0 = scmp.ne.s32.totalorder %s255_s5, %s323_s20  ;;  %p329_p2 = scmp.lt.s32.totalorder %s323_s20, %s323_s20 }
  0x9c   :  { %v51_v16 = vsel %vm34_vm0, %v47_v15, 0.0 }
  0x9d   :  { %52 = vadd.xlane.f32.xlu1 %v51_v16  ;;  %p330_p3 = por %p329_p2, %p328_p1 }
  0x9f   :  { %p331_p4 = pnand %p330_p3, %p324_p0 }
 0x126   :  { %v50_v24 = vpop.xlane.xlu1 %49 }
 0x127   :  { %v54_v25 = vmul.f32 0.03125, %v50_v24 }
 0x129   :  { %v56_v26 = vadd.f32 1e-05, %v54_v25 }
 0x12a   :  { %v53_v27 = vpop.xlane.xlu1 %52 }
 0x12b   :  { %315 = vrsqrt.f32 %v56_v26  ;;  %v55_v28 = vmul.f32 0.03125, %v53_v27 }
 0x12d   :  { %v57_v29 = vadd.f32 1e-05, %v55_v28  ;;  %v170_v28 = vld [vmem:[#allocation3] sm:$0xff] }
 0x12f   :  { %317 = vrsqrt.f32 %v57_v29 }
 0x135   :  { %v316_v30 = vpop.eup %315 }
 0x136   :  { %v60_v31 = vmul.f32 %v316_v30, %v44_v9  ;;  %v171_v30 = vld [vmem:[#allocation3 + $0x8] sm:$0xff] }
 0x138   :  { %v69_v34 = vmul.f32 %v265_v32, %v60_v31 }
 0x139   :  { %v318_v33 = vpop.eup %317 }
 0x13a   :  { %v61_v35 = vmul.f32 %v318_v33, %v45_v13  ;;  %v78_v38 = vadd.f32 %v266_v36, %v69_v34 }
 0x13c   :  { %v70_v37 = vmul.f32 %v265_v32, %v61_v35 }
 0x13e   :  { %v79_v39 = vadd.f32 %v266_v36, %v70_v37 }
 0x140   :  { %v80_v40 = vpack.c.bf16 %v79_v39, %v78_v38 }
 0x142   :  { %81 = vst.msk [vmem:[#allocation2] sm:$0xff] %vm34_vm0, %v80_v40 }
 0x149   :  { %v93_v41 = vld [vmem:[#allocation2] sm:$0xff] }
 0x14a   :  { %287 = vmatmul.mubr.msk.bf16.vlgmr.msra.gmra.mrb[0].mxu0 %vm34_vm0, %v93_v41 }
 0x21d   :  { %v145_v3 = vpop.f32.mrb[0].mxu0 }
 0x21e   :  { %v146_v4 = vadd.f32 %v268_v2, %v145_v3  ;;  %v288_v5 = vpop.f32.mrb[1].mxu0 }
 0x21f   :  { %v148_v6 = vpop.f32.mrb[2].mxu0 }
 0x220   :  { %v154_v7 = vmul.f32 0.044715, %v146_v4  ;;  %v149_v8 = vadd.f32 %v268_v2, %v148_v6  ;;  %v289_v9 = vpop.f32.mrb[3].mxu0  ;;  %v152_v22 = vmul.f32 0.5, %v146_v4 }
 0x222   :  { %v156_v10 = vmul.f32 %v154_v7, %v146_v4  ;;  %v155_v11 = vmul.f32 0.044715, %v149_v8  ;;  %v153_v23 = vmul.f32 0.5, %v149_v8 }
 0x224   :  { %v158_v12 = vmul.f32 %v156_v10, %v146_v4  ;;  %v157_v13 = vmul.f32 %v155_v11, %v149_v8 }
 0x226   :  { %v159_v14 = vmul.f32 %v157_v13, %v149_v8  ;;  %v160_v15 = vadd.f32 %v158_v12, %v146_v4 }
 0x228   :  { %v161_v16 = vadd.f32 %v159_v14, %v149_v8  ;;  %v162_v17 = vmul.f32 0.7978846, %v160_v15 }
 0x22a   :  { %v163_v18 = vmul.f32 0.7978846, %v161_v16  ;;  %319 = vtanh.f32 %v162_v17 }
 0x22c   :  { %321 = vtanh.f32 %v163_v18 }
 0x234   :  { %v320_v19 = vpop.eup %319 }
 0x235   :  { %v166_v20 = vadd.f32 1.0, %v320_v19 }
 0x236   :  { %v322_v21 = vpop.eup %321 }
 0x237   :  { %v167_v24 = vadd.f32 1.0, %v322_v21  ;;  %v168_v25 = vmul.f32 %v166_v20, %v152_v22 }
 0x239   :  { %v169_v26 = vmul.f32 %v167_v24, %v153_v23 }
 0x23b   :  { %v172_v27 = vpack.c.bf16 %v169_v26, %v168_v25 }
 0x23d   :  { %307 = vmatmul.mubr.bf16.vlgmr.msra.gmra.mrb[0].mxu1 %v172_v27 }
 0x310   :  { %v231_v29 = vpop.f32.mrb[0].mxu1 }
 0x311   :  { %v238_v31 = vadd.f32 %v231_v29, %v170_v28  ;;  %v308_v32 = vpop.f32.mrb[1].mxu1 }
 0x312   :  { %v234_v33 = vpop.f32.mrb[2].mxu1 }
 0x313   :  { %240 = vst.msk [vmem:[#allocation3] sm:$0xff] %vm34_vm0, %v238_v31  ;;  %v239_v34 = vadd.f32 %v234_v33, %v171_v30  ;;  %v309_v35 = vpop.f32.mrb[3].mxu1 }
 0x315   :  { %241 = vst.msk [vmem:[#allocation3 + $0x8] sm:$0xff] %vm34_vm0, %v239_v34 }
 0x31a   :  { %v245_v36 = vld [vmem:[#allocation3] sm:$0xff] }
 0x31b   :  { %247 = vst.msk [vmem:[#allocation4] sm:$0xff] %vm34_vm0, %v245_v36 }
 0x31c   :  { %v246_v37 = vld [vmem:[#allocation3 + $0x8] sm:$0xff] }
 0x31d   :  { %248 = vst.msk [vmem:[#allocation4 + $0x8] sm:$0xff] %vm34_vm0, %v246_v37 }
 0x31e   :  { %334 = shalt.err (!%p331_p4)
}
 0x31f   :  { %s335_s23 = scalar_lea.hbm %s513_s7, 256 }
 0x320   :  { %p336_p5 = scmp.ne.s32.totalorder %s513_s7, %s335_s23  ;;  %p339_p6 = scmp.lt.u32.totalorder %s335_s23, %s513_s7 }
 0x322   :  { %p341_p7 = pnand %p339_p6, %p336_p5 }
 0x324   :  { %344 = shalt.err (!%p341_p7)
}
 0x325   :  { %s350_s28 = smov 128   ;;  %s351_s29 = smov 8  }
 0x326   :  { %260 = dma.vmem_to_hbm [thread:$0]  %s255_s5, 256, %s513_s7, [#allocation5], %s350_s28, %s350_s28, %s351_s29  }
 0x327   :  { %345 = dma.done.wait [#allocation5], 256  }
 0x328   :  { %346 = vsyncadd [#allocation5], 4294967040 }
 0x329   :  { %264 = vsyncpa [#allocation5], 1 }

</bundles_post_ra>
